<compile_context>
chip_gen: v5e
topology: v5e:2x2
jax: 0.10.0
libtpu: 0.0.40
codegen_flags: <defaults>
</compile_context>

<pallas_src>
import functools
from typing import NamedTuple

import jax
import jax.numpy as jnp
from jax.experimental import pallas as pl
from jax.experimental.pallas import tpu as pltpu

_LANE = 128      # vreg lane width
_SUBLANE = 8     # vreg sublane count (f32)
# Conservative per-core resident-weight budget.  v7x has 64 MiB VMEM per
# TensorCore and with a "parallel" batch grid EACH core holds its own copy of
# the weights; leave headroom for tiles / scratch.
_RESIDENT_VMEM_BUDGET = 56 << 20


def _round_up(x: int, m: int) -> int:
    return (x + m - 1) // m * m


def _default_tile_m(batch: int) -> int:
    """Pick a batch tile: >= ~4 grid steps for megacore sharding + pipelining,
    tiles in [8, 512] rows (bounded activation vreg pressure; drop to 128 on
    v5e if bundle dumps show vst/spill pressure on wide hidden layers)."""
    if batch <= _SUBLANE:
        return max(batch, 1)
    tm = _round_up(pl.cdiv(batch, 4), _SUBLANE)
    return int(min(max(tm, _SUBLANE), 512))


def _fused_mlp_kernel(*refs, num_layers: int):
    """refs = (x_ref, w0, b0, ..., w{L-1}, b{L-1}, o_ref).

    One batch tile of the full MLP: matmuls on the MXU (f32 accumulate), bias
    add / ReLU on the VPU, all intermediates stay on-chip.
    """
    x_ref = refs[0]
    o_ref = refs[-1]
    wb = refs[1:-1]

    h = x_ref[...]
    for i in range(num_layers):
        w = wb[2 * i][...]
        b = wb[2 * i + 1][...]                 # (1, n) -> broadcasts over rows
        lhs = h.astype(jnp.bfloat16) if w.dtype == jnp.bfloat16 else h
        y = jnp.dot(lhs, w, preferred_element_type=jnp.float32) + b
        if i < num_layers - 1:                 # ReLU after every layer but last
            y = jnp.maximum(y, 0.0)
        h = y
    o_ref[...] = h.astype(o_ref.dtype)


class PreparedMLP(NamedTuple):
    flat: tuple        # (W0, b0, W1, b1, ...) padded; weights f32 or bf16
    dims: tuple        # logical widths  (in, h1, ..., out)
    pdims: tuple       # widths used by the kernel (hidden dims lane-padded)
    num_layers: int


def prepare_params(params, *, use_bf16: bool = False) -> PreparedMLP:
    """One-time host-side preparation of (W, b) pairs.

    Pads only the *internal* hidden widths to 128 lanes (zero padding is exact:
    padded K rows / N columns contribute 0, ReLU(0)=0) and optionally casts the
    weights to bf16.  Call once and reuse across forward passes so no per-call
    HBM pass over the weights is paid.
    """
    num_layers = len(params)
    dims = [params[0][0].shape[0]] + [w.shape[1] for (w, _) in params]
    pdims = list(dims)
    for i in range(1, num_layers):             # keep in_f and out_f exact
        pdims[i] = _round_up(dims[i], _LANE)

    wdtype = jnp.bfloat16 if use_bf16 else jnp.float32
    flat = []
    for i, (w, b) in enumerate(params):
        w_p = (jnp.zeros((pdims[i], pdims[i + 1]), jnp.float32)
               .at[:dims[i], :dims[i + 1]].set(w).astype(wdtype))
        b_p = (jnp.zeros((1, pdims[i + 1]), jnp.float32)
               .at[0, :dims[i + 1]].set(b))    # bias kept f32 (negligible bytes)
        flat += [w_p, b_p]
    return PreparedMLP(tuple(flat), tuple(dims), tuple(pdims), num_layers)


def linear_model_forward(prepared: PreparedMLP, x, *, tile_m: int | None = None):
    """Fused forward pass of LinearModel as a single Pallas kernel."""
    batch, in_f = x.shape
    assert in_f == prepared.dims[0], "input feature mismatch"
    pdims = prepared.pdims
    L = prepared.num_layers

    if tile_m is None:
        tile_m = _default_tile_m(batch)
    if batch < _SUBLANE:
        tile_m = batch                          # block dim == full dim -> exempt
    else:
        tile_m = _round_up(min(tile_m, _round_up(batch, _SUBLANE)), _SUBLANE)
    grid = (pl.cdiv(batch, tile_m),)

    # --- VMEM budget -------------------------------------------------------
    wbytes = jnp.dtype(prepared.flat[0].dtype).itemsize
    weight_bytes = sum(pdims[i] * pdims[i + 1] for i in range(L)) * wbytes
    bias_bytes = sum(pdims[i + 1] for i in range(L)) * 4
    resident = weight_bytes + bias_bytes
    if resident > _RESIDENT_VMEM_BUDGET:
        # TODO(synk): add a K/N-tiled fallback (extra trailing 'arbitrary' grid
        # axis + pltpu.VMEM accumulator with pl.when init/finalize, or
        # pltpu.emit_pipeline over weight tiles) for models whose resident
        # weights exceed per-core VMEM (64 MiB on v7x).
        raise NotImplementedError(
            f"resident weights ({resident >> 20} MiB) exceed the per-core VMEM "
            f"budget ({_RESIDENT_VMEM_BUDGET >> 20} MiB); tiled fallback not "
            "implemented")
    io_tile_bytes = 2 * tile_m * (pdims[0] + pdims[-1]) * 4   # dbl-buffered x/out
    act_bytes = 2 * tile_m * max(pdims) * 4                   # live intermediates
    vmem_limit = int(min(128 << 20,
                         max(8 << 20,
                             (2 * resident + io_tile_bytes + act_bytes) * 1.25)))

    # --- Cost hint for XLA scheduling around the custom call ----------------
    flops = 2 * batch * sum(pdims[i] * pdims[i + 1] for i in range(L))
    bytes_accessed = (batch * pdims[0] * 4 + batch * pdims[-1] * 4
                      + weight_bytes + bias_bytes)
    cost = pl.CostEstimate(flops=flops, transcendentals=0,
                           bytes_accessed=bytes_accessed)

    out_shape = jax.ShapeDtypeStruct((batch, pdims[-1]), jnp.float32)

    def build(weight_pipeline_mode):
        extra = ({} if weight_pipeline_mode is None
                 else {"pipeline_mode": weight_pipeline_mode})
        # x: tiled over the batch grid axis (last dim == full array dim, so no
        # lane padding is required on the host).
        in_specs = [pl.BlockSpec((tile_m, pdims[0]), lambda i: (i, 0))]
        # Weights / biases: constant index_map -> DMA'd once, VMEM-resident.
        for li in range(L):
            in_specs.append(
                pl.BlockSpec((pdims[li], pdims[li + 1]), lambda i: (0, 0), **extra))
            in_specs.append(
                pl.BlockSpec((1, pdims[li + 1]), lambda i: (0, 0), **extra))
        out_specs = pl.BlockSpec((tile_m, pdims[-1]), lambda i: (i, 0))
        return pl.pallas_call(
            functools.partial(_fused_mlp_kernel, num_layers=L),
            out_shape=out_shape,
            grid=grid,
            in_specs=in_specs,
            out_specs=out_specs,
            compiler_params=pltpu.CompilerParams(
                dimension_semantics=("parallel",),    # shard batch tiles (v7x)
                vmem_limit_bytes=vmem_limit,
            ),
            cost_estimate=cost,
        )

    try:
        # Constant-index weight/bias blocks are never re-DMA'd; requesting a
        # single pipeline buffer halves their resident VMEM (v7x: 64 MiB/TC).
        return build(pl.Buffered(1))(x, *prepared.flat)
    except Exception:  # fallback for jax versions without single-buffer support
        return build(None)(x, *prepared.flat)


# ----------------------------- host-side helpers -----------------------------
def init_linear_params(key, in_features: int, out_features: int):
    """torch.nn.Linear-style init (uniform +-1/sqrt(fan_in)), stored as (in, out)."""
    kw, kb = jax.random.split(key)
    bound = 1.0 / jnp.sqrt(jnp.float32(in_features))
    w = jax.random.uniform(kw, (in_features, out_features), jnp.float32, -bound, bound)
    b = jax.random.uniform(kb, (out_features,), jnp.float32, -bound, bound)
    return w, b


def make_linear_model_params(key, in_features: int, layer_sizes):
    """Matches LinearModel.__init__: layers.insert(0, in_features); chain of Linear."""
    dims = [in_features] + list(layer_sizes)
    keys = jax.random.split(key, len(dims) - 1)
    return [init_linear_params(keys[i], dims[i], dims[i + 1])
            for i in range(len(dims) - 1)]


def _reference_forward(params, x):
    """Plain-JAX reference matching LinearModel.forward."""
    n = len(params)
    for i, (w, b) in enumerate(params):
        x = x @ w + b
        if i < n - 1:
            x = jnp.maximum(x, 0.0)
    return x


if __name__ == "__main__":
    key = jax.random.PRNGKey(0)
    k_params, k_x, k_x2 = jax.random.split(key, 3)

    in_features = 32
    layer_sizes = [64, 48, 16]   # hidden dims + output dim, as passed to LinearModel
    params = make_linear_model_params(k_params, in_features, layer_sizes)

    # One-time preparation (padding / optional bf16 cast), reused across calls.
    prepared_f32 = prepare_params(params, use_bf16=False)

    # Small batch: single tile, grid=(1,).
    batch = 8
    x = jax.random.normal(k_x, (batch, in_features), jnp.float32)
    out = linear_model_forward(prepared_f32, x)
    jax.block_until_ready(out)
    ref = _reference_forward(params, x)
    assert out.shape == (batch, layer_sizes[-1])
    assert jnp.allclose(out, ref, atol=1e-5, rtol=1e-5), "small-batch mismatch"

    # Larger, non-multiple batch: default tile_m -> grid of 4 steps with a
    # ragged final block (exercises megacore sharding + masked edge stores).
    batch2 = 200
    x2 = jax.random.normal(k_x2, (batch2, in_features), jnp.float32)
    out2 = linear_model_forward(prepared_f32, x2)
    jax.block_until_ready(out2)
    ref2 = _reference_forward(params, x2)
    assert out2.shape == (batch2, layer_sizes[-1])
    assert jnp.allclose(out2, ref2, atol=1e-5, rtol=1e-5), "gridded-batch mismatch"

    # bf16-weight path (f32 accumulate) with an appropriately loose tolerance.
    prepared_bf16 = prepare_params(params, use_bf16=True)
    out3 = linear_model_forward(prepared_bf16, x2)
    jax.block_until_ready(out3)
    assert out3.shape == (batch2, layer_sizes[-1])
    assert jnp.allclose(out3, ref2, atol=5e-2, rtol=5e-2), "bf16 path mismatch"

    print("KERNEL_OK")
</pallas_src>

<mosaic_0001>
module attributes {stable_mosaic.version = 11 : i64} {
  func.func @_fused_mlp_kernel(%arg0: i32, %arg1: memref<8x32xf32, #tpu.memory_space<vmem>>, %arg2: memref<32x128xf32, #tpu.memory_space<vmem>>, %arg3: memref<1x128xf32, #tpu.memory_space<vmem>>, %arg4: memref<128x128xf32, #tpu.memory_space<vmem>>, %arg5: memref<1x128xf32, #tpu.memory_space<vmem>>, %arg6: memref<128x16xf32, #tpu.memory_space<vmem>>, %arg7: memref<1x16xf32, #tpu.memory_space<vmem>>, %arg8: memref<8x16xf32, #tpu.memory_space<vmem>>) attributes {dimension_semantics = [#tpu.dimension_semantics<parallel>], iteration_bounds = array<i64: 1>, scalar_prefetch = 0 : i64, scratch_operands = 0 : i64, tpu.core_type = #tpu.core_type<tc>, window_params = [{transform_indices = @transform_0, window_bounds = array<i64: 8, 32>}, {pipeline_mode = #tpu.pipeline_mode<synchronous>, transform_indices = @transform_1, window_bounds = array<i64: 32, 128>}, {pipeline_mode = #tpu.pipeline_mode<synchronous>, transform_indices = @transform_2, window_bounds = array<i64: 1, 128>}, {pipeline_mode = #tpu.pipeline_mode<synchronous>, transform_indices = @transform_3, window_bounds = array<i64: 128, 128>}, {pipeline_mode = #tpu.pipeline_mode<synchronous>, transform_indices = @transform_4, window_bounds = array<i64: 1, 128>}, {pipeline_mode = #tpu.pipeline_mode<synchronous>, transform_indices = @transform_5, window_bounds = array<i64: 128, 16>}, {pipeline_mode = #tpu.pipeline_mode<synchronous>, transform_indices = @transform_6, window_bounds = array<i64: 1, 16>}, {transform_indices = @transform_7, window_bounds = array<i64: 8, 16>}]} {
    %c0 = arith.constant 0 : index
    %c0_0 = arith.constant 0 : index
    %0 = vector.load %arg1[%c0, %c0_0] : memref<8x32xf32, #tpu.memory_space<vmem>>, vector<8x32xf32>
    %c0_1 = arith.constant 0 : index
    %c0_2 = arith.constant 0 : index
    %1 = vector.load %arg2[%c0_1, %c0_2] : memref<32x128xf32, #tpu.memory_space<vmem>>, vector<32x128xf32>
    %c0_3 = arith.constant 0 : index
    %c0_4 = arith.constant 0 : index
    %2 = vector.load %arg3[%c0_3, %c0_4] : memref<1x128xf32, #tpu.memory_space<vmem>>, vector<1x128xf32>
    %cst = arith.constant dense<0.000000e+00> : vector<8x128xf32>
    %3 = tpu.matmul %0, %1, %cst {dimension_numbers = #tpu.dot_dimension_numbers<[1], [0], [0], [1], [0, 0, 1, 1], [], []>} : vector<8x32xf32>, vector<32x128xf32>, vector<8x128xf32> -> vector<8x128xf32>
    %4 = vector.broadcast %2 : vector<1x128xf32> to vector<8x128xf32>
    %5 = arith.addf %3, %4 : vector<8x128xf32>
    %cst_5 = arith.constant 0.000000e+00 : f32
    %6 = vector.broadcast %cst_5 : f32 to vector<8x128xf32>
    %7 = arith.maximumf %5, %6 : vector<8x128xf32>
    %c0_6 = arith.constant 0 : index
    %c0_7 = arith.constant 0 : index
    %8 = vector.load %arg4[%c0_6, %c0_7] : memref<128x128xf32, #tpu.memory_space<vmem>>, vector<128x128xf32>
    %c0_8 = arith.constant 0 : index
    %c0_9 = arith.constant 0 : index
    %9 = vector.load %arg5[%c0_8, %c0_9] : memref<1x128xf32, #tpu.memory_space<vmem>>, vector<1x128xf32>
    %cst_10 = arith.constant dense<0.000000e+00> : vector<8x128xf32>
    %10 = tpu.matmul %7, %8, %cst_10 {dimension_numbers = #tpu.dot_dimension_numbers<[1], [0], [0], [1], [0, 0, 1, 1], [], []>} : vector<8x128xf32>, vector<128x128xf32>, vector<8x128xf32> -> vector<8x128xf32>
    %11 = vector.broadcast %9 : vector<1x128xf32> to vector<8x128xf32>
    %12 = arith.addf %10, %11 : vector<8x128xf32>
    %cst_11 = arith.constant 0.000000e+00 : f32
    %13 = vector.broadcast %cst_11 : f32 to vector<8x128xf32>
    %14 = arith.maximumf %12, %13 : vector<8x128xf32>
    %c0_12 = arith.constant 0 : index
    %c0_13 = arith.constant 0 : index
    %15 = vector.load %arg6[%c0_12, %c0_13] : memref<128x16xf32, #tpu.memory_space<vmem>>, vector<128x16xf32>
    %c0_14 = arith.constant 0 : index
    %c0_15 = arith.constant 0 : index
    %16 = vector.load %arg7[%c0_14, %c0_15] : memref<1x16xf32, #tpu.memory_space<vmem>>, vector<1x16xf32>
    %cst_16 = arith.constant dense<0.000000e+00> : vector<8x16xf32>
    %17 = tpu.matmul %14, %15, %cst_16 {dimension_numbers = #tpu.dot_dimension_numbers<[1], [0], [0], [1], [0, 0, 1, 1], [], []>} : vector<8x128xf32>, vector<128x16xf32>, vector<8x16xf32> -> vector<8x16xf32>
    %18 = vector.broadcast %16 : vector<1x16xf32> to vector<8x16xf32>
    %19 = arith.addf %17, %18 : vector<8x16xf32>
    %c0_17 = arith.constant 0 : index
    %c0_18 = arith.constant 0 : index
    %20 = vector.load %arg8[%c0_17, %c0_18] : memref<8x16xf32, #tpu.memory_space<vmem>>, vector<8x16xf32>
    tpu.vector_store %arg8[%c0_17, %c0_18], %19 {strides = array<i32>} : memref<8x16xf32, #tpu.memory_space<vmem>>, vector<8x16xf32>,
    return
  }
  func.func @transform_0(%arg0: i32) -> (i32, i32) {
    %c0_i32 = arith.constant 0 : i32
    %c0_i32_0 = arith.constant 0 : i32
    return %arg0, %c0_i32 : i32, i32
  }
  func.func @transform_1(%arg0: i32) -> (i32, i32) {
    %c0_i32 = arith.constant 0 : i32
    %c0_i32_0 = arith.constant 0 : i32
    %c0_i32_1 = arith.constant 0 : i32
    return %c0_i32, %c0_i32_0 : i32, i32
  }
  func.func @transform_2(%arg0: i32) -> (i32, i32) {
    %c0_i32 = arith.constant 0 : i32
    %c0_i32_0 = arith.constant 0 : i32
    %c0_i32_1 = arith.constant 0 : i32
    return %c0_i32, %c0_i32_0 : i32, i32
  }
  func.func @transform_3(%arg0: i32) -> (i32, i32) {
    %c0_i32 = arith.constant 0 : i32
    %c0_i32_0 = arith.constant 0 : i32
    %c0_i32_1 = arith.constant 0 : i32
    return %c0_i32, %c0_i32_0 : i32, i32
  }
  func.func @transform_4(%arg0: i32) -> (i32, i32) {
    %c0_i32 = arith.constant 0 : i32
    %c0_i32_0 = arith.constant 0 : i32
    %c0_i32_1 = arith.constant 0 : i32
    return %c0_i32, %c0_i32_0 : i32, i32
  }
  func.func @transform_5(%arg0: i32) -> (i32, i32) {
    %c0_i32 = arith.constant 0 : i32
    %c0_i32_0 = arith.constant 0 : i32
    %c0_i32_1 = arith.constant 0 : i32
    return %c0_i32, %c0_i32_0 : i32, i32
  }
  func.func @transform_6(%arg0: i32) -> (i32, i32) {
    %c0_i32 = arith.constant 0 : i32
    %c0_i32_0 = arith.constant 0 : i32
    %c0_i32_1 = arith.constant 0 : i32
    return %c0_i32, %c0_i32_0 : i32, i32
  }
  func.func @transform_7(%arg0: i32) -> (i32, i32) {
    %c0_i32 = arith.constant 0 : i32
    %c0_i32_0 = arith.constant 0 : i32
    return %arg0, %c0_i32 : i32, i32
  }
}

module attributes {stable_mosaic.version = 11 : i64} {
  func.func @_fused_mlp_kernel(%arg0: i32, %arg1: memref<8x32xf32, #tpu.memory_space<vmem>>, %arg2: memref<32x128xf32, #tpu.memory_space<vmem>>, %arg3: memref<1x128xf32, #tpu.memory_space<vmem>>, %arg4: memref<128x128xf32, #tpu.memory_space<vmem>>, %arg5: memref<1x128xf32, #tpu.memory_space<vmem>>, %arg6: memref<128x16xf32, #tpu.memory_space<vmem>>, %arg7: memref<1x16xf32, #tpu.memory_space<vmem>>, %arg8: memref<8x16xf32, #tpu.memory_space<vmem>>) attributes {dimension_semantics = [#tpu.dimension_semantics<parallel>], iteration_bounds = array<i64: 1>, scalar_prefetch = 0 : i64, scratch_operands = 0 : i64, tpu.core_type = #tpu.core_type<tc>, window_params = [{transform_indices = @transform_0, window_bounds = array<i64: 8, 32>}, {pipeline_mode = #tpu.pipeline_mode<synchronous>, transform_indices = @transform_1, window_bounds = array<i64: 32, 128>}, {pipeline_mode = #tpu.pipeline_mode<synchronous>, transform_indices = @transform_2, window_bounds = array<i64: 1, 128>}, {pipeline_mode = #tpu.pipeline_mode<synchronous>, transform_indices = @transform_3, window_bounds = array<i64: 128, 128>}, {pipeline_mode = #tpu.pipeline_mode<synchronous>, transform_indices = @transform_4, window_bounds = array<i64: 1, 128>}, {pipeline_mode = #tpu.pipeline_mode<synchronous>, transform_indices = @transform_5, window_bounds = array<i64: 128, 16>}, {pipeline_mode = #tpu.pipeline_mode<synchronous>, transform_indices = @transform_6, window_bounds = array<i64: 1, 16>}, {transform_indices = @transform_7, window_bounds = array<i64: 8, 16>}]} {
    %c0 = arith.constant 0 : index
    %c0_0 = arith.constant 0 : index
    %0 = vector.load %arg1[%c0, %c0_0] : memref<8x32xf32, #tpu.memory_space<vmem>>, vector<8x32xf32>
    %c0_1 = arith.constant 0 : index
    %c0_2 = arith.constant 0 : index
    %1 = vector.load %arg2[%c0_1, %c0_2] : memref<32x128xf32, #tpu.memory_space<vmem>>, vector<32x128xf32>
    %c0_3 = arith.constant 0 : index
    %c0_4 = arith.constant 0 : index
    %2 = vector.load %arg3[%c0_3, %c0_4] : memref<1x128xf32, #tpu.memory_space<vmem>>, vector<1x128xf32>
    %cst = arith.constant dense<0.000000e+00> : vector<8x128xf32>
    %3 = tpu.matmul %0, %1, %cst {dimension_numbers = #tpu.dot_dimension_numbers<[1], [0], [0], [1], [0, 0, 1, 1], [], []>} : vector<8x32xf32>, vector<32x128xf32>, vector<8x128xf32> -> vector<8x128xf32>
    %4 = vector.broadcast %2 : vector<1x128xf32> to vector<8x128xf32>
    %5 = arith.addf %3, %4 : vector<8x128xf32>
    %cst_5 = arith.constant 0.000000e+00 : f32
    %6 = vector.broadcast %cst_5 : f32 to vector<8x128xf32>
    %7 = arith.maximumf %5, %6 : vector<8x128xf32>
    %c0_6 = arith.constant 0 : index
    %c0_7 = arith.constant 0 : index
    %8 = vector.load %arg4[%c0_6, %c0_7] : memref<128x128xf32, #tpu.memory_space<vmem>>, vector<128x128xf32>
    %c0_8 = arith.constant 0 : index
    %c0_9 = arith.constant 0 : index
    %9 = vector.load %arg5[%c0_8, %c0_9] : memref<1x128xf32, #tpu.memory_space<vmem>>, vector<1x128xf32>
    %cst_10 = arith.constant dense<0.000000e+00> : vector<8x128xf32>
    %10 = tpu.matmul %7, %8, %cst_10 {dimension_numbers = #tpu.dot_dimension_numbers<[1], [0], [0], [1], [0, 0, 1, 1], [], []>} : vector<8x128xf32>, vector<128x128xf32>, vector<8x128xf32> -> vector<8x128xf32>
    %11 = vector.broadcast %9 : vector<1x128xf32> to vector<8x128xf32>
    %12 = arith.addf %10, %11 : vector<8x128xf32>
    %cst_11 = arith.constant 0.000000e+00 : f32
    %13 = vector.broadcast %cst_11 : f32 to vector<8x128xf32>
    %14 = arith.maximumf %12, %13 : vector<8x128xf32>
    %c0_12 = arith.constant 0 : index
    %c0_13 = arith.constant 0 : index
    %15 = vector.load %arg6[%c0_12, %c0_13] : memref<128x16xf32, #tpu.memory_space<vmem>>, vector<128x16xf32>
    %c0_14 = arith.constant 0 : index
    %c0_15 = arith.constant 0 : index
    %16 = vector.load %arg7[%c0_14, %c0_15] : memref<1x16xf32, #tpu.memory_space<vmem>>, vector<1x16xf32>
    %cst_16 = arith.constant dense<0.000000e+00> : vector<8x16xf32>
    %17 = tpu.matmul %14, %15, %cst_16 {dimension_numbers = #tpu.dot_dimension_numbers<[1], [0], [0], [1], [0, 0, 1, 1], [], []>} : vector<8x128xf32>, vector<128x16xf32>, vector<8x16xf32> -> vector<8x16xf32>
    %18 = vector.broadcast %16 : vector<1x16xf32> to vector<8x16xf32>
    %19 = arith.addf %17, %18 : vector<8x16xf32>
    %c0_17 = arith.constant 0 : index
    %c0_18 = arith.constant 0 : index
    %20 = vector.load %arg8[%c0_17, %c0_18] : memref<8x16xf32, #tpu.memory_space<vmem>>, vector<8x16xf32>
    tpu.vector_store %arg8[%c0_17, %c0_18], %19 {strides = array<i32>} : memref<8x16xf32, #tpu.memory_space<vmem>>, vector<8x16xf32>,
    return
  }
  func.func @transform_0(%arg0: i32) -> (i32, i32) {
    %c0_i32 = arith.constant 0 : i32
    %c0_i32_0 = arith.constant 0 : i32
    return %arg0, %c0_i32 : i32, i32
  }
  func.func @transform_1(%arg0: i32) -> (i32, i32) {
    %c0_i32 = arith.constant 0 : i32
    %c0_i32_0 = arith.constant 0 : i32
    %c0_i32_1 = arith.constant 0 : i32
    return %c0_i32, %c0_i32_0 : i32, i32
  }
  func.func @transform_2(%arg0: i32) -> (i32, i32) {
    %c0_i32 = arith.constant 0 : i32
    %c0_i32_0 = arith.constant 0 : i32
    %c0_i32_1 = arith.constant 0 : i32
    return %c0_i32, %c0_i32_0 : i32, i32
  }
  func.func @transform_3(%arg0: i32) -> (i32, i32) {
    %c0_i32 = arith.constant 0 : i32
    %c0_i32_0 = arith.constant 0 : i32
    %c0_i32_1 = arith.constant 0 : i32
    return %c0_i32, %c0_i32_0 : i32, i32
  }
  func.func @transform_4(%arg0: i32) -> (i32, i32) {
    %c0_i32 = arith.constant 0 : i32
    %c0_i32_0 = arith.constant 0 : i32
    %c0_i32_1 = arith.constant 0 : i32
    return %c0_i32, %c0_i32_0 : i32, i32
  }
  func.func @transform_5(%arg0: i32) -> (i32, i32) {
    %c0_i32 = arith.constant 0 : i32
    %c0_i32_0 = arith.constant 0 : i32
    %c0_i32_1 = arith.constant 0 : i32
    return %c0_i32, %c0_i32_0 : i32, i32
  }
  func.func @transform_6(%arg0: i32) -> (i32, i32) {
    %c0_i32 = arith.constant 0 : i32
    %c0_i32_0 = arith.constant 0 : i32
    %c0_i32_1 = arith.constant 0 : i32
    return %c0_i32, %c0_i32_0 : i32, i32
  }
  func.func @transform_7(%arg0: i32) -> (i32, i32) {
    %c0_i32 = arith.constant 0 : i32
    %c0_i32_0 = arith.constant 0 : i32
    return %arg0, %c0_i32 : i32, i32
  }
}

</mosaic_0001>

<bundles_post_ra>
// kernel: tpu_custom_call.1
= control target key start
LH: loop header
LB: loop body
LE: loop exit
PB: predicated region body
PF: predicated region fallthrough
CT: control target
= control target key end

     0   :  { %12 = vsyncpa [#allocation3], 0  ;;  %s395_s0 = inlined_call_operand.vmem [shape: f32[8,32], index: 0, kind: input, shape index: {}]   ;;  %s396_s1 = inlined_call_operand.hbm [shape: f32[32,128], index: 1, kind: input, shape index: {}]   ;;  %s397_s2 = inlined_call_operand.vmem [shape: f32[1,128], index: 2, kind: input, shape index: {}]   ;;  %s398_s3 = inlined_call_operand.vmem [shape: f32[128,128], index: 3, kind: input, shape index: {}]   ;;  %s399_s4 = inlined_call_operand.vmem [shape: f32[1,128], index: 4, kind: input, shape index: {}]   ;;  %s400_s5 = inlined_call_operand.vmem [shape: f32[128,16], index: 5, kind: input, shape index: {}]   ;;  %s401_s6 = inlined_call_operand.vmem [shape: f32[1,16], index: 6, kind: input, shape index: {}]   ;;  %s402_s7 = inlined_call_operand.hbm [shape: f32[8,16], index: 7, kind: output, shape index: {}]  }
   0x1   :  { %13 = vsyncpa [#allocation4], 0  ;;  %s20_s26 = sshll.u32 %s396_s1, 4  ;;  %s237_s27 = smov [#allocation2]   ;;  %s21_s26 = int_to_ptr.hbm [resolvable:$true] %s20_s26 }
   0x2   :  { %s22_s28 = sshll.u32 %s237_s27, 4  ;;  %s238_s29 = smov 128   ;;  %s23_s28 = int_to_ptr.vmem [resolvable:$true] %s22_s28 }
   0x3   :  { %s239_s30 = smov 8  }
   0x4   :  { %28 = dma.hbm_to_vmem [thread:$0]  %s21_s26, 512, %s23_s28, [#allocation3], %s238_s29, %s238_s29, %s239_s30  }
   0x5   :  { %233 = dma.done.wait [#allocation3], 512  }
   0x6   :  { %234 = vsyncadd [#allocation3], 4294966784  ;;  %v47_v0 = vld [vmem:[#allocation2 + $0x18] sm:$0xff]  ;;  %v46_v1 = vld [vmem:[#allocation2 + $0x10] sm:$0xff]  ;;  %vm52_vm0 = vcmask 261120   ;;  %s240_s25 = smov [#allocation5]  }
   0x7   :  { %68 = vmatpush.msra.mxu0 %v47_v0  ;;  %v92_v2 = vld [vmem:[%s398_s3 + $0x78] sm:$0xff]  ;;  %v45_v3 = vld [vmem:[#allocation2 + $0x8] sm:$0xff]  ;;  %v91_v4 = vld [vmem:[%s398_s3 + $0x70] sm:$0xff]  ;;  %s165_s26 = sshll.u32 %s240_s25, 4  ;;  %s167_s29 = sshll.u32 %s402_s7, 4  ;;  %vm158_vm1 = vcmask 130048   ;;  %s166_s26 = int_to_ptr.vmem [resolvable:$true] %s165_s26  ;;  %s168_s29 = int_to_ptr.hbm [resolvable:$true] %s167_s29 }
   0x8   :  { %97 = vmatpush.msra.mxu1 %v92_v2  ;;  %v90_v5 = vld [vmem:[%s398_s3 + $0x68] sm:$0xff]  ;;  %v44_v6 = vld [vmem:[#allocation2] sm:$0xff]  ;;  %v88_v9 = vld [vmem:[%s398_s3 + $0x58] sm:$0xff] }
   0x9   :  { %69 = vmatpush.msra.mxu0 %v46_v1  ;;  %v43_v7 = vld [vmem:[%s395_s0] sm:$0xff]  ;;  %v87_v10 = vld [vmem:[%s398_s3 + $0x50] sm:$0xff]  ;;  %v86_v11 = vld [vmem:[%s398_s3 + $0x48] sm:$0xff] }
   0xa   :  { %98 = vmatpush.msra.mxu1 %v91_v4  ;;  %v89_v8 = vld [vmem:[%s398_s3 + $0x60] sm:$0xff]  ;;  %v84_v13 = vld [vmem:[%s398_s3 + $0x38] sm:$0xff]  ;;  %v83_v14 = vld [vmem:[%s398_s3 + $0x30] sm:$0xff] }
   0xb   :  { %70 = vmatpush.msra.mxu0 %v45_v3  ;;  %v85_v12 = vld [vmem:[%s398_s3 + $0x40] sm:$0xff]  ;;  %v82_v15 = vld [vmem:[%s398_s3 + $0x28] sm:$0xff]  ;;  %v80_v17 = vld [vmem:[%s398_s3 + $0x18] sm:$0xff] }
   0xc   :  { %99 = vmatpush.msra.mxu1 %v90_v5  ;;  %v81_v16 = vld [vmem:[%s398_s3 + $0x20] sm:$0xff]  ;;  %v79_v18 = vld [vmem:[%s398_s3 + $0x10] sm:$0xff]  ;;  %v78_v19 = vld [vmem:[%s398_s3 + $0x8] sm:$0xff] }
   0xd   :  { %71 = vmatpush.msra.mxu0 %v44_v6  ;;  %v77_v20 = vld [vmem:[%s398_s3] sm:$0xff]  ;;  %v133_v21 = vld [vmem:[%s400_s5 + $0x78] sm:$0xff]  ;;  %v132_v22 = vld [vmem:[%s400_s5 + $0x70] sm:$0xff] }
   0xe   :  { %177 = vmatmul.msk.f32.vlgmr.msra.gmra.mxu0 %vm52_vm0, %v43_v7  ;;  %100 = vmatpush.msra.mxu1 %v89_v8  ;;  %v131_v23 = vld [vmem:[%s400_s5 + $0x68] sm:$0xff]  ;;  %v130_v24 = vld [vmem:[%s400_s5 + $0x60] sm:$0xff]  ;;  %v129_v25 = vld [vmem:[%s400_s5 + $0x58] sm:$0xff] }
   0xf   :  { %138 = vmatpush.msra.mxu2 %v133_v21  ;;  %v128_v26 = vld [vmem:[%s400_s5 + $0x50] sm:$0xff]  ;;  %v127_v27 = vld [vmem:[%s400_s5 + $0x48] sm:$0xff]  ;;  %v126_v28 = vld [vmem:[%s400_s5 + $0x40] sm:$0xff] }
  0x10   :  { %101 = vmatpush.msra.mxu1 %v88_v9  ;;  %v125_v29 = vld [vmem:[%s400_s5 + $0x38] sm:$0xff]  ;;  %v124_v30 = vld [vmem:[%s400_s5 + $0x30] sm:$0xff]  ;;  %v123_v31 = vld [vmem:[%s400_s5 + $0x28] sm:$0xff] }
  0x11   :  { %139 = vmatpush.msra.mxu2 %v132_v22  ;;  %v122_v32 = vld [vmem:[%s400_s5 + $0x20] sm:$0xff]  ;;  %v121_v33 = vld [vmem:[%s400_s5 + $0x18] sm:$0xff]  ;;  %v120_v38 = vld [vmem:[%s400_s5 + $0x10] sm:$0xff] }
  0x12   :  { %102 = vmatpush.msra.mxu1 %v87_v10  ;;  %v182_v34 = vld [vmem:[%s397_s2] ss:$0 sm:$0xff]  ;;  %v119_v39 = vld [vmem:[%s400_s5 + $0x8] sm:$0xff] }
  0x13   :  { %140 = vmatpush.msra.mxu2 %v131_v23  ;;  %v118_v40 = vld [vmem:[%s400_s5] sm:$0xff] }
  0x14   :  { %103 = vmatpush.msra.mxu1 %v86_v11  ;;  %v183_v41 = vld [vmem:[%s399_s4] ss:$0 sm:$0xff] }
  0x15   :  { %141 = vmatpush.msra.mxu2 %v130_v24  ;;  %v184_v45 = vld [vmem:[%s401_s6] ss:$0 sm:$0xff] }
  0x16   :  { %104 = vmatpush.msra.mxu1 %v85_v12 }
  0x17   :  { %142 = vmatpush.msra.mxu2 %v129_v25 }
  0x18   :  { %105 = vmatpush.msra.mxu1 %v84_v13 }
  0x19   :  { %143 = vmatpush.msra.mxu2 %v128_v26 }
  0x1a   :  { %106 = vmatpush.msra.mxu1 %v83_v14 }
  0x1b   :  { %144 = vmatpush.msra.mxu2 %v127_v27 }
  0x1c   :  { %107 = vmatpush.msra.mxu1 %v82_v15 }
  0x1d   :  { %145 = vmatpush.msra.mxu2 %v126_v28 }
  0x1e   :  { %108 = vmatpush.msra.mxu1 %v81_v16 }
  0x1f   :  { %146 = vmatpush.msra.mxu2 %v125_v29 }
  0x20   :  { %109 = vmatpush.msra.mxu1 %v80_v17 }
  0x21   :  { %147 = vmatpush.msra.mxu2 %v124_v30 }
  0x22   :  { %110 = vmatpush.msra.mxu1 %v79_v18 }
  0x23   :  { %148 = vmatpush.msra.mxu2 %v123_v31 }
  0x24   :  { %111 = vmatpush.msra.mxu1 %v78_v19 }
  0x25   :  { %149 = vmatpush.msra.mxu2 %v122_v32 }
  0x26   :  { %112 = vmatpush.msra.mxu1 %v77_v20 }
  0x27   :  { %150 = vmatpush.msra.mxu2 %v121_v33 }
  0x29   :  { %151 = vmatpush.msra.mxu2 %v120_v38 }
  0x2b   :  { %152 = vmatpush.msra.mxu2 %v119_v39 }
  0x2d   :  { %153 = vmatpush.msra.mxu2 %v118_v40 }
  0x8b   :  { %v73_v35 = vpop.f32.mrf.mxu0 }
  0x8c   :  { %v74_v36 = vadd.f32 %v182_v34, %v73_v35 }
  0x8e   :  { %v76_v37 = vmax.f32 %v74_v36, 0.0 }
  0x90   :  { %113 = vmatmul.f32.vlgmr.msra.gmra.mxu1 %v76_v37 }
 0x10d   :  { %v114_v42 = vpop.f32.mrf.mxu1 }
 0x10e   :  { %v115_v43 = vadd.f32 %v183_v41, %v114_v42 }
 0x110   :  { %v117_v44 = vmax.f32 %v115_v43, 0.0 }
 0x112   :  { %154 = vmatmul.f32.vlgmr.msra.gmra.mxu2 %v117_v44 }
 0x195   :  { %v155_v46 = vpop.f32.mrf.mxu2 }
 0x196   :  { %v156_v47 = vadd.f32 %v184_v45, %v155_v46 }
 0x198   :  { %159 = vst.msk [vmem:[#allocation5] sm:$0xff] %vm158_vm1, %v156_v47 }
 0x199   :  { %170 = dma.vmem_to_hbm [thread:$0]  %s166_s26, 128, %s168_s29, [#allocation4]  }
 0x19a   :  { %235 = dma.done.wait [#allocation4], 128  }
 0x19b   :  { %236 = vsyncadd [#allocation4], 4294967168 }
 0x19c   :  { %175 = vsyncpa [#allocation3], 1 }
 0x19d   :  { %176 = vsyncpa [#allocation4], 1 }

// kernel: tpu_custom_call.1
= control target key start
LH: loop header
LB: loop body
LE: loop exit
PB: predicated region body
PF: predicated region fallthrough
CT: control target
= control target key end

     0   :  { %12 = vsyncpa [#allocation3], 0  ;;  %s395_s0 = inlined_call_operand.vmem [shape: f32[8,32], index: 0, kind: input, shape index: {}]   ;;  %s396_s1 = inlined_call_operand.hbm [shape: f32[32,128], index: 1, kind: input, shape index: {}]   ;;  %s397_s2 = inlined_call_operand.vmem [shape: f32[1,128], index: 2, kind: input, shape index: {}]   ;;  %s398_s3 = inlined_call_operand.vmem [shape: f32[128,128], index: 3, kind: input, shape index: {}]   ;;  %s399_s4 = inlined_call_operand.vmem [shape: f32[1,128], index: 4, kind: input, shape index: {}]   ;;  %s400_s5 = inlined_call_operand.vmem [shape: f32[128,16], index: 5, kind: input, shape index: {}]   ;;  %s401_s6 = inlined_call_operand.vmem [shape: f32[1,16], index: 6, kind: input, shape index: {}]   ;;  %s402_s7 = inlined_call_operand.hbm [shape: f32[8,16], index: 7, kind: output, shape index: {}]  }
   0x1   :  { %13 = vsyncpa [#allocation4], 0  ;;  %s20_s26 = sshll.u32 %s396_s1, 4  ;;  %s237_s27 = smov [#allocation2]   ;;  %s21_s26 = int_to_ptr.hbm [resolvable:$true] %s20_s26 }
   0x2   :  { %s22_s28 = sshll.u32 %s237_s27, 4  ;;  %s238_s29 = smov 128   ;;  %s23_s28 = int_to_ptr.vmem [resolvable:$true] %s22_s28 }
   0x3   :  { %s239_s30 = smov 8  }
   0x4   :  { %28 = dma.hbm_to_vmem [thread:$0]  %s21_s26, 512, %s23_s28, [#allocation3], %s238_s29, %s238_s29, %s239_s30  }
   0x5   :  { %233 = dma.done.wait [#allocation3], 512  }
   0x6   :  { %234 = vsyncadd [#allocation3], 4294966784  ;;  %v47_v0 = vld [vmem:[#allocation2 + $0x18] sm:$0xff]  ;;  %v46_v1 = vld [vmem:[#allocation2 + $0x10] sm:$0xff]  ;;  %vm52_vm0 = vcmask 261120   ;;  %s240_s25 = smov [#allocation5]  }
   0x7   :  { %68 = vmatpush.msra.mxu0 %v47_v0  ;;  %v92_v2 = vld [vmem:[%s398_s3 + $0x78] sm:$0xff]  ;;  %v45_v3 = vld [vmem:[#allocation2 + $0x8] sm:$0xff]  ;;  %v91_v4 = vld [vmem:[%s398_s3 + $0x70] sm:$0xff]  ;;  %s165_s26 = sshll.u32 %s240_s25, 4  ;;  %s167_s29 = sshll.u32 %s402_s7, 4  ;;  %vm158_vm1 = vcmask 130048   ;;  %s166_s26 = int_to_ptr.vmem [resolvable:$true] %s165_s26  ;;  %s168_s29 = int_to_ptr.hbm [resolvable:$true] %s167_s29 }
   0x8   :  { %97 = vmatpush.msra.mxu1 %v92_v2  ;;  %v90_v5 = vld [vmem:[%s398_s3 + $0x68] sm:$0xff]  ;;  %v44_v6 = vld [vmem:[#allocation2] sm:$0xff]  ;;  %v88_v9 = vld [vmem:[%s398_s3 + $0x58] sm:$0xff] }
   0x9   :  { %69 = vmatpush.msra.mxu0 %v46_v1  ;;  %v43_v7 = vld [vmem:[%s395_s0] sm:$0xff]  ;;  %v87_v10 = vld [vmem:[%s398_s3 + $0x50] sm:$0xff]  ;;  %v86_v11 = vld [vmem:[%s398_s3 + $0x48] sm:$0xff] }
   0xa   :  { %98 = vmatpush.msra.mxu1 %v91_v4  ;;  %v89_v8 = vld [vmem:[%s398_s3 + $0x60] sm:$0xff]  ;;  %v84_v13 = vld [vmem:[%s398_s3 + $0x38] sm:$0xff]  ;;  %v83_v14 = vld [vmem:[%s398_s3 + $0x30] sm:$0xff] }
   0xb   :  { %70 = vmatpush.msra.mxu0 %v45_v3  ;;  %v85_v12 = vld [vmem:[%s398_s3 + $0x40] sm:$0xff]  ;;  %v82_v15 = vld [vmem:[%s398_s3 + $0x28] sm:$0xff]  ;;  %v80_v17 = vld [vmem:[%s398_s3 + $0x18] sm:$0xff] }
   0xc   :  { %99 = vmatpush.msra.mxu1 %v90_v5  ;;  %v81_v16 = vld [vmem:[%s398_s3 + $0x20] sm:$0xff]  ;;  %v79_v18 = vld [vmem:[%s398_s3 + $0x10] sm:$0xff]  ;;  %v78_v19 = vld [vmem:[%s398_s3 + $0x8] sm:$0xff] }
   0xd   :  { %71 = vmatpush.msra.mxu0 %v44_v6  ;;  %v77_v20 = vld [vmem:[%s398_s3] sm:$0xff]  ;;  %v133_v21 = vld [vmem:[%s400_s5 + $0x78] sm:$0xff]  ;;  %v132_v22 = vld [vmem:[%s400_s5 + $0x70] sm:$0xff] }
   0xe   :  { %177 = vmatmul.msk.f32.vlgmr.msra.gmra.mxu0 %vm52_vm0, %v43_v7  ;;  %100 = vmatpush.msra.mxu1 %v89_v8  ;;  %v131_v23 = vld [vmem:[%s400_s5 + $0x68] sm:$0xff]  ;;  %v130_v24 = vld [vmem:[%s400_s5 + $0x60] sm:$0xff]  ;;  %v129_v25 = vld [vmem:[%s400_s5 + $0x58] sm:$0xff] }
   0xf   :  { %138 = vmatpush.msra.mxu2 %v133_v21  ;;  %v128_v26 = vld [vmem:[%s400_s5 + $0x50] sm:$0xff]  ;;  %v127_v27 = vld [vmem:[%s400_s5 + $0x48] sm:$0xff]  ;;  %v126_v28 = vld [vmem:[%s400_s5 + $0x40] sm:$0xff] }
  0x10   :  { %101 = vmatpush.msra.mxu1 %v88_v9  ;;  %v125_v29 = vld [vmem:[%s400_s5 + $0x38] sm:$0xff]  ;;  %v124_v30 = vld [vmem:[%s400_s5 + $0x30] sm:$0xff]  ;;  %v123_v31 = vld [vmem:[%s400_s5 + $0x28] sm:$0xff] }
  0x11   :  { %139 = vmatpush.msra.mxu2 %v132_v22  ;;  %v122_v32 = vld [vmem:[%s400_s5 + $0x20] sm:$0xff]  ;;  %v121_v33 = vld [vmem:[%s400_s5 + $0x18] sm:$0xff]  ;;  %v120_v38 = vld [vmem:[%s400_s5 + $0x10] sm:$0xff] }
  0x12   :  { %102 = vmatpush.msra.mxu1 %v87_v10  ;;  %v182_v34 = vld [vmem:[%s397_s2] ss:$0 sm:$0xff]  ;;  %v119_v39 = vld [vmem:[%s400_s5 + $0x8] sm:$0xff] }
  0x13   :  { %140 = vmatpush.msra.mxu2 %v131_v23  ;;  %v118_v40 = vld [vmem:[%s400_s5] sm:$0xff] }
  0x14   :  { %103 = vmatpush.msra.mxu1 %v86_v11  ;;  %v183_v41 = vld [vmem:[%s399_s4] ss:$0 sm:$0xff] }
  0x15   :  { %141 = vmatpush.msra.mxu2 %v130_v24  ;;  %v184_v45 = vld [vmem:[%s401_s6] ss:$0 sm:$0xff] }
  0x16   :  { %104 = vmatpush.msra.mxu1 %v85_v12 }
  0x17   :  { %142 = vmatpush.msra.mxu2 %v129_v25 }
  0x18   :  { %105 = vmatpush.msra.mxu1 %v84_v13 }
  0x19   :  { %143 = vmatpush.msra.mxu2 %v128_v26 }
  0x1a   :  { %106 = vmatpush.msra.mxu1 %v83_v14 }
  0x1b   :  { %144 = vmatpush.msra.mxu2 %v127_v27 }
  0x1c   :  { %107 = vmatpush.msra.mxu1 %v82_v15 }
  0x1d   :  { %145 = vmatpush.msra.mxu2 %v126_v28 }
  0x1e   :  { %108 = vmatpush.msra.mxu1 %v81_v16 }
  0x1f   :  { %146 = vmatpush.msra.mxu2 %v125_v29 }
  0x20   :  { %109 = vmatpush.msra.mxu1 %v80_v17 }
  0x21   :  { %147 = vmatpush.msra.mxu2 %v124_v30 }
  0x22   :  { %110 = vmatpush.msra.mxu1 %v79_v18 }
  0x23   :  { %148 = vmatpush.msra.mxu2 %v123_v31 }
  0x24   :  { %111 = vmatpush.msra.mxu1 %v78_v19 }
  0x25   :  { %149 = vmatpush.msra.mxu2 %v122_v32 }
  0x26   :  { %112 = vmatpush.msra.mxu1 %v77_v20 }
  0x27   :  { %150 = vmatpush.msra.mxu2 %v121_v33 }
  0x29   :  { %151 = vmatpush.msra.mxu2 %v120_v38 }
  0x2b   :  { %152 = vmatpush.msra.mxu2 %v119_v39 }
  0x2d   :  { %153 = vmatpush.msra.mxu2 %v118_v40 }
  0x8b   :  { %v73_v35 = vpop.f32.mrf.mxu0 }
  0x8c   :  { %v74_v36 = vadd.f32 %v182_v34, %v73_v35 }
  0x8e   :  { %v76_v37 = vmax.f32 %v74_v36, 0.0 }
  0x90   :  { %113 = vmatmul.f32.vlgmr.msra.gmra.mxu1 %v76_v37 }
 0x10d   :  { %v114_v42 = vpop.f32.mrf.mxu1 }
 0x10e   :  { %v115_v43 = vadd.f32 %v183_v41, %v114_v42 }
 0x110   :  { %v117_v44 = vmax.f32 %v115_v43, 0.0 }
 0x112   :  { %154 = vmatmul.f32.vlgmr.msra.gmra.mxu2 %v117_v44 }
 0x195   :  { %v155_v46 = vpop.f32.mrf.mxu2 }
 0x196   :  { %v156_v47 = vadd.f32 %v184_v45, %v155_v46 }
 0x198   :  { %159 = vst.msk [vmem:[#allocation5] sm:$0xff] %vm158_vm1, %v156_v47 }
 0x199   :  { %170 = dma.vmem_to_hbm [thread:$0]  %s166_s26, 128, %s168_s29, [#allocation4]  }
 0x19a   :  { %235 = dma.done.wait [#allocation4], 128  }
 0x19b   :  { %236 = vsyncadd [#allocation4], 4294967168 }
 0x19c   :  { %175 = vsyncpa [#allocation3], 1 }
 0x19d   :  { %176 = vsyncpa [#allocation4], 1 }

</bundles_post_ra>
